<compile_context>
chip_gen: v7x
topology: tpu7x:2x2x1
jax: 0.10.0
libtpu: 0.0.40
codegen_flags: <defaults>
</compile_context>

<pallas_src>
import functools

import jax
import jax.numpy as jnp
from jax import lax
from jax.experimental import pallas as pl
from jax.experimental.pallas import tpu as pltpu


def _round_up(x, m):
    return ((x + m - 1) // m) * m


# ----------------------------------------------------------------------------
# Kernel 1: InstanceNorm3d statistics (affine=False, eps=1e-5, biased var).
# Tiled reduction over the spatial axis; outputs per-(n,c) scale & shift with
# norm(x) = x * scale + shift.
# ----------------------------------------------------------------------------
def _stats_kernel(x_ref, scale_ref, shift_ref, *, inv_count):
    l = pl.program_id(1)

    @pl.when(l == 0)
    def _():
        scale_ref[...] = jnp.zeros_like(scale_ref)      # running sum
        shift_ref[...] = jnp.zeros_like(shift_ref)      # running sum of squares

    x = x_ref[...].astype(jnp.float32)                  # (RT, LT)
    scale_ref[...] += jnp.sum(x, axis=-1, keepdims=True)
    shift_ref[...] += jnp.sum(x * x, axis=-1, keepdims=True)

    @pl.when(l == pl.num_programs(1) - 1)
    def _():
        s1 = scale_ref[...]
        s2 = shift_ref[...]
        mean = s1 * inv_count
        # TODO(synk): one-pass E[x^2]-mean^2 can cancel for large-mean inputs;
        # use a two-pass / Welford reduction if that matters.
        var = jnp.maximum(s2 * inv_count - mean * mean, 0.0)
        inv_std = lax.rsqrt(var + 1e-5)
        scale_ref[...] = inv_std
        shift_ref[...] = -mean * inv_std


def instance_norm_stats(x):
    """x: (N, C, D, H, W) f32 -> (scale, shift), each (N, C, 1) f32."""
    N, C, D, H, W = x.shape
    rows, L = N * C, D * H * W
    rows_p = _round_up(rows, 8)                    # robust for any N*C
    LT = min(_round_up(L, 128), 32768)             # lane tile of the reduction
    L_pad = _round_up(L, LT)                       # zero-pad: sums unaffected
    x2 = jnp.pad(x.reshape(rows, L), ((0, rows_p - rows), (0, L_pad - L)))
    RT = 8

    scale, shift = pl.pallas_call(
        functools.partial(_stats_kernel, inv_count=1.0 / L),
        out_shape=(jax.ShapeDtypeStruct((rows_p, 1), jnp.float32),
                   jax.ShapeDtypeStruct((rows_p, 1), jnp.float32)),
        grid_spec=pltpu.PrefetchScalarGridSpec(
            num_scalar_prefetch=0,
            grid=(rows_p // RT, L_pad // LT),
            in_specs=[pl.BlockSpec((RT, LT), lambda i, l: (i, l))],
            out_specs=(pl.BlockSpec((RT, 1), lambda i, l: (i, 0)),
                       pl.BlockSpec((RT, 1), lambda i, l: (i, 0))),
        ),
        compiler_params=pltpu.CompilerParams(
            dimension_semantics=("parallel", "arbitrary")),
    )(x2)
    return scale[:rows].reshape(N, C, 1), shift[:rows].reshape(N, C, 1)


# ----------------------------------------------------------------------------
# Kernel 2: fused (normalise + ReLU + halo mask) -> tap-folded Conv3d.
# Grid = (N, Dout, J): per-sample resident flat activation, one output depth
# plane per grid step (exact depth stride), lane tiles of width TS per plane.
# ----------------------------------------------------------------------------
def _fused_norm_relu_conv(x_flat, scale, shift, mask, w_fold, *, cout, kd,
                          jk_offs, p128, ts, off, stride, dout, p_tile):
    N, cin, lp_in = x_flat.shape
    J = p_tile // ts
    win = ts + off
    span = ts + (kd - 1) * p128
    n_jk = len(jk_offs)
    k_all = kd * n_jk * cin
    fold = cin < 128          # if Cin already fills the MXU K dim, don't fold

    def kernel(x_ref, sc_ref, sh_ref, mk_ref, w_ref, o_ref, *scr):
        d = pl.program_id(1)
        j = pl.program_id(2)
        q0 = pl.multiple_of(d * (stride * p128) + j * ts, 128)
        xw = x_ref[:, pl.ds(q0, win)].astype(jnp.float32)      # (Cin, WIN)
        mk = mk_ref[:, pl.ds(q0, win)].astype(jnp.float32)     # (1,   WIN)
        # InstanceNorm apply + ReLU (f32), re-zero the halo, bf16 for the MXU.
        yn = jnp.maximum(xw * sc_ref[...] + sh_ref[...], 0.0) * mk
        yn = yn.astype(jnp.bfloat16)
        # kh*kw unaligned in-plane shifts, materialised once; the kd depth taps
        # are 128-aligned slices of these slabs (plane stride = p128).
        shifted = [yn[:, t:t + span] for t in jk_offs]          # (Cin, span)
        if fold:
            rhs_ref, = scr
            for i in range(kd):
                for t, s in enumerate(shifted):
                    r0 = (i * n_jk + t) * cin
                    rhs_ref[r0:r0 + cin, :] = s[:, i * p128:i * p128 + ts]
            out = jnp.dot(w_ref[...], rhs_ref[...],             # K = k_all
                          preferred_element_type=jnp.float32)
        else:
            w = w_ref[...]
            out = jnp.zeros((cout, ts), jnp.float32)
            for i in range(kd):
                for t, s in enumerate(shifted):
                    c0 = (i * n_jk + t) * cin
                    out = out + jnp.dot(w[:, c0:c0 + cin],
                                        s[:, i * p128:i * p128 + ts],
                                        preferred_element_type=jnp.float32)
        o_ref[...] = out                                        # (Cout, TS)

    # VMEM budget: double-buffered inputs/outputs + scratch + f32 temporaries.
    est = (2 * (cin * lp_in * 2 + lp_in * 2 + cout * k_all * 2 + 2 * cin * 4
                + cout * ts * 4)
           + (k_all * ts * 2 if fold else 0)
           + cin * win * 6 + n_jk * cin * span * 2 + cout * ts * 8)
    vmem_limit = int(min(max(2 * est, 32 << 20), 96 << 20))
    scratch = [pltpu.VMEM((k_all, ts), jnp.bfloat16)] if fold else []

    return pl.pallas_call(
        kernel,
        out_shape=jax.ShapeDtypeStruct((N, cout, dout * p_tile), jnp.float32),
        grid_spec=pltpu.PrefetchScalarGridSpec(
            num_scalar_prefetch=0,
            grid=(N, dout, J),
            in_specs=[
                pl.BlockSpec((None, cin, lp_in), lambda n, d, j: (n, 0, 0)),
                pl.BlockSpec((None, cin, 1), lambda n, d, j: (n, 0, 0)),
                pl.BlockSpec((None, cin, 1), lambda n, d, j: (n, 0, 0)),
                pl.BlockSpec((1, lp_in), lambda n, d, j: (0, 0)),
                pl.BlockSpec((cout, k_all), lambda n, d, j: (0, 0)),
            ],
            out_specs=pl.BlockSpec((None, cout, ts),
                                   lambda n, d, j: (n, 0, d * J + j)),
            scratch_shapes=scratch,
        ),
        compiler_params=pltpu.CompilerParams(
            # N first so megacore prefers sharding samples; splitting d/j
            # would duplicate the per-sample resident activation DMA.
            dimension_semantics=("parallel", "parallel", "arbitrary"),
            vmem_limit_bytes=vmem_limit),
    )(x_flat, scale, shift, mask, w_fold)


# ----------------------------------------------------------------------------
# ConvBlock forward: InstanceNorm3d -> ReLU -> Conv3d(bias=False)
# ----------------------------------------------------------------------------
@functools.partial(jax.jit, static_argnames=("stride", "padding"))
def conv_block_forward(x, weight, *, stride=1, padding=1):
    """x: (N, Cin, D, H, W) f32; weight: (Cout, Cin, kd, kh, kw) f32."""
    N, Cin, D, H, W = x.shape
    Cout, Cw, kd, kh, kw = weight.shape
    assert Cw == Cin
    p = padding

    # ---- 1. per-(n, c) InstanceNorm statistics ----------------------------
    scale, shift = instance_norm_stats(x)

    # ---- 2. geometry: depth planes padded to a 128-multiple stride --------
    Dp, Hp, Wp = D + 2 * p, H + 2 * p, W + 2 * p
    plane = Hp * Wp
    p128 = _round_up(plane, 128)
    Do1, Ho1, Wo1 = Dp - kd + 1, Hp - kh + 1, Wp - kw + 1
    Dout = (Do1 - 1) // stride + 1          # only strided depth planes computed

    # Lane tile: largest 128-multiple divisor of p128 that is <= 2048.
    m = p128 // 128
    g = max(d for d in range(1, m + 1) if m % d == 0 and d * 128 <= 2048)
    TS = 128 * g
    p_tile = p128                           # TS divides p128 by construction
    max_tap = (kd - 1) * p128 + (kh - 1) * Wp + (kw - 1)
    OFF = _round_up(max_tap, 128)
    Lp_in = max((Dout - 1) * stride * p128 + p_tile + OFF, Dp * p128)

    # ---- 3. host-side prep: bf16 flat activation, halo mask, folded weights
    xp = jnp.pad(x, ((0, 0), (0, 0), (p, p), (p, p), (p, p)))
    xp = jnp.pad(xp.reshape(N, Cin, Dp, plane),
                 ((0, 0), (0, 0), (0, 0), (0, p128 - plane)))
    x_flat = jnp.pad(xp.reshape(N, Cin, Dp * p128),
                     ((0, 0), (0, 0), (0, Lp_in - Dp * p128)))
    x_flat = x_flat.astype(jnp.bfloat16)

    msk = jnp.pad(jnp.ones((D, H, W), jnp.float32), ((p, p), (p, p), (p, p)))
    msk = jnp.pad(msk.reshape(Dp, plane), ((0, 0), (0, p128 - plane)))
    msk = jnp.pad(msk.reshape(1, Dp * p128), ((0, 0), (0, Lp_in - Dp * p128)))
    mask = msk.astype(jnp.bfloat16)
    # TODO(synk): generate the mask in-kernel from iota compares instead.

    # folded weight: contraction order (i, j, k, c) -> (Cout, kd*kh*kw*Cin)
    w_fold = jnp.transpose(weight, (0, 2, 3, 4, 1)).reshape(
        Cout, kd * kh * kw * Cin).astype(jnp.bfloat16)
    jk_offs = tuple(j * Wp + k for j in range(kh) for k in range(kw))

    # ---- 4. fused norm + ReLU + conv kernel --------------------------------
    out_flat = _fused_norm_relu_conv(
        x_flat, scale, shift, mask, w_fold,
        cout=Cout, kd=kd, jk_offs=jk_offs, p128=p128, ts=TS, off=OFF,
        stride=stride, dout=Dout, p_tile=p_tile)

    # ---- 5. recover NCDHW (depth stride already exact; subsample in-plane) -
    out = out_flat.reshape(N, Cout, Dout, p_tile)[:, :, :, :plane]
    out = out.reshape(N, Cout, Dout, Hp, Wp)[:, :, :, :Ho1:stride, :Wo1:stride]
    return out


# ----------------------------------------------------------------------------
# Pure-JAX reference for validation.
# ----------------------------------------------------------------------------
def _reference(x, weight, stride, padding):
    mean = jnp.mean(x, axis=(2, 3, 4), keepdims=True)
    var = jnp.mean((x - mean) ** 2, axis=(2, 3, 4), keepdims=True)
    y = jnp.maximum((x - mean) * lax.rsqrt(var + 1e-5), 0.0)
    return lax.conv_general_dilated(
        y, weight,
        window_strides=(stride,) * 3,
        padding=[(padding, padding)] * 3,
        dimension_numbers=("NCDHW", "OIDHW", "NCDHW"),
    )


if __name__ == "__main__":
    # Small shapes consistent with the module: N=2, Cin=4, spatial=8^3,
    # Cout=8, kernel=3, padding=1; validate stride 1 and 2.
    N, Cin, D, H, W = 2, 4, 8, 8, 8
    Cout, k, padding = 8, 3, 1

    key = jax.random.PRNGKey(0)
    kx, kw_ = jax.random.split(key)
    x = jax.random.normal(kx, (N, Cin, D, H, W), dtype=jnp.float32)
    fan_in = Cin * k * k * k
    bound = 1.0 / (fan_in ** 0.5)
    weight = jax.random.uniform(
        kw_, (Cout, Cin, k, k, k), dtype=jnp.float32, minval=-bound, maxval=bound)

    for stride in (1, 2):
        out = conv_block_forward(x, weight, stride=stride, padding=padding)
        out = jax.block_until_ready(out)
        ref = _reference(x, weight, stride, padding)
        assert out.shape == ref.shape, (out.shape, ref.shape)
        max_err = float(jnp.max(jnp.abs(out - ref)))
        # bf16 activation + bf16 MXU operands (f32 accumulation) -> loosened
        # tolerance vs the pure-f32 reference.
        assert max_err < 3e-2, (stride, max_err)
    print("KERNEL_OK")
</pallas_src>

<mosaic_0001>
module attributes {stable_mosaic.version = 11 : i64} {
  func.func @_stats_kernel(%arg0: i32, %arg1: i32, %arg2: memref<8x512xf32, #tpu.memory_space<vmem>>, %arg3: memref<8x1xf32, #tpu.memory_space<vmem>>, %arg4: memref<8x1xf32, #tpu.memory_space<vmem>>) attributes {dimension_semantics = [#tpu.dimension_semantics<parallel>, #tpu.dimension_semantics<arbitrary>], iteration_bounds = array<i64: 1, 1>, scalar_prefetch = 0 : i64, scratch_operands = 0 : i64, tpu.core_type = #tpu.core_type<tc>, window_params = [{transform_indices = @transform_0, window_bounds = array<i64: 8, 512>}, {transform_indices = @transform_1, window_bounds = array<i64: 8, 1>}, {transform_indices = @transform_2, window_bounds = array<i64: 8, 1>}]} {
    %c0_i32 = arith.constant 0 : i32
    %0 = arith.cmpi eq, %arg1, %c0_i32 : i32
    %1 = arith.extui %0 : i1 to i32
    %c0_i32_0 = arith.constant 0 : i32
    %2 = arith.cmpi ne, %1, %c0_i32_0 : i32
    scf.if %2 {
      %cst_13 = arith.constant 0.000000e+00 : f32
      %18 = vector.broadcast %cst_13 : f32 to vector<8x1xf32>
      %c0_14 = arith.constant 0 : index
      %c0_15 = arith.constant 0 : index
      %19 = vector.load %arg3[%c0_14, %c0_15] : memref<8x1xf32, #tpu.memory_space<vmem>>, vector<8x1xf32>
      tpu.vector_store %arg3[%c0_14, %c0_15], %18 {strides = array<i32>} : memref<8x1xf32, #tpu.memory_space<vmem>>, vector<8x1xf32>,
      %cst_16 = arith.constant 0.000000e+00 : f32
      %20 = vector.broadcast %cst_16 : f32 to vector<8x1xf32>
      %c0_17 = arith.constant 0 : index
      %c0_18 = arith.constant 0 : index
      %21 = vector.load %arg4[%c0_17, %c0_18] : memref<8x1xf32, #tpu.memory_space<vmem>>, vector<8x1xf32>
      tpu.vector_store %arg4[%c0_17, %c0_18], %20 {strides = array<i32>} : memref<8x1xf32, #tpu.memory_space<vmem>>, vector<8x1xf32>,
    } else {
    }
    %c0 = arith.constant 0 : index
    %c0_1 = arith.constant 0 : index
    %3 = vector.load %arg2[%c0, %c0_1] : memref<8x512xf32, #tpu.memory_space<vmem>>, vector<8x512xf32>
    %c0_2 = arith.constant 0 : index
    %c0_3 = arith.constant 0 : index
    %4 = vector.load %arg3[%c0_2, %c0_3] : memref<8x1xf32, #tpu.memory_space<vmem>>, vector<8x1xf32>
    %cst = arith.constant dense<0.000000e+00> : vector<8xf32>
    %5 = vector.multi_reduction <add>, %3, %cst [1] : vector<8x512xf32> to vector<8xf32>
    %6 = vector.shape_cast %5 : vector<8xf32> to vector<8x1xf32>
    %7 = arith.addf %4, %6 : vector<8x1xf32>
    %c0_4 = arith.constant 0 : index
    %c0_5 = arith.constant 0 : index
    %8 = vector.load %arg3[%c0_4, %c0_5] : memref<8x1xf32, #tpu.memory_space<vmem>>, vector<8x1xf32>
    tpu.vector_store %arg3[%c0_4, %c0_5], %7 {strides = array<i32>} : memref<8x1xf32, #tpu.memory_space<vmem>>, vector<8x1xf32>,
    %c0_6 = arith.constant 0 : index
    %c0_7 = arith.constant 0 : index
    %9 = vector.load %arg4[%c0_6, %c0_7] : memref<8x1xf32, #tpu.memory_space<vmem>>, vector<8x1xf32>
    %10 = arith.mulf %3, %3 : vector<8x512xf32>
    %cst_8 = arith.constant dense<0.000000e+00> : vector<8xf32>
    %11 = vector.multi_reduction <add>, %10, %cst_8 [1] : vector<8x512xf32> to vector<8xf32>
    %12 = vector.shape_cast %11 : vector<8xf32> to vector<8x1xf32>
    %13 = arith.addf %9, %12 : vector<8x1xf32>
    %c0_9 = arith.constant 0 : index
    %c0_10 = arith.constant 0 : index
    %14 = vector.load %arg4[%c0_9, %c0_10] : memref<8x1xf32, #tpu.memory_space<vmem>>, vector<8x1xf32>
    tpu.vector_store %arg4[%c0_9, %c0_10], %13 {strides = array<i32>} : memref<8x1xf32, #tpu.memory_space<vmem>>, vector<8x1xf32>,
    %c0_i32_11 = arith.constant 0 : i32
    %15 = arith.cmpi eq, %arg1, %c0_i32_11 : i32
    %16 = arith.extui %15 : i1 to i32
    %c0_i32_12 = arith.constant 0 : i32
    %17 = arith.cmpi ne, %16, %c0_i32_12 : i32
    scf.if %17 {
      %c0_13 = arith.constant 0 : index
      %c0_14 = arith.constant 0 : index
      %18 = vector.load %arg3[%c0_13, %c0_14] : memref<8x1xf32, #tpu.memory_space<vmem>>, vector<8x1xf32>
      %c0_15 = arith.constant 0 : index
      %c0_16 = arith.constant 0 : index
      %19 = vector.load %arg4[%c0_15, %c0_16] : memref<8x1xf32, #tpu.memory_space<vmem>>, vector<8x1xf32>
      %cst_17 = arith.constant 0.001953125 : f32
      %20 = vector.broadcast %cst_17 : f32 to vector<8x1xf32>
      %21 = arith.mulf %18, %20 : vector<8x1xf32>
      %cst_18 = arith.constant 0.001953125 : f32
      %22 = vector.broadcast %cst_18 : f32 to vector<8x1xf32>
      %23 = arith.mulf %19, %22 : vector<8x1xf32>
      %24 = arith.mulf %21, %21 : vector<8x1xf32>
      %25 = arith.subf %23, %24 : vector<8x1xf32>
      %cst_19 = arith.constant 0.000000e+00 : f32
      %26 = vector.broadcast %cst_19 : f32 to vector<8x1xf32>
      %27 = arith.maximumf %25, %26 : vector<8x1xf32>
      %cst_20 = arith.constant 9.99999974E-6 : f32
      %28 = vector.broadcast %cst_20 : f32 to vector<8x1xf32>
      %29 = arith.addf %27, %28 : vector<8x1xf32>
      %30 = math.rsqrt %29 : vector<8x1xf32>
      %c0_21 = arith.constant 0 : index
      %c0_22 = arith.constant 0 : index
      %31 = vector.load %arg3[%c0_21, %c0_22] : memref<8x1xf32, #tpu.memory_space<vmem>>, vector<8x1xf32>
      tpu.vector_store %arg3[%c0_21, %c0_22], %30 {strides = array<i32>} : memref<8x1xf32, #tpu.memory_space<vmem>>, vector<8x1xf32>,
      %cst_23 = arith.constant 0.000000e+00 : f32
      %32 = vector.broadcast %cst_23 : f32 to vector<8x1xf32>
      %33 = arith.subf %32, %21 : vector<8x1xf32>
      %34 = arith.mulf %33, %30 : vector<8x1xf32>
      %c0_24 = arith.constant 0 : index
      %c0_25 = arith.constant 0 : index
      %35 = vector.load %arg4[%c0_24, %c0_25] : memref<8x1xf32, #tpu.memory_space<vmem>>, vector<8x1xf32>
      tpu.vector_store %arg4[%c0_24, %c0_25], %34 {strides = array<i32>} : memref<8x1xf32, #tpu.memory_space<vmem>>, vector<8x1xf32>,
    } else {
    }
    return
  }
  func.func @transform_0(%arg0: i32, %arg1: i32) -> (i32, i32) {
    %c0_i32 = arith.constant 0 : i32
    return %arg0, %arg1 : i32, i32
  }
  func.func @transform_1(%arg0: i32, %arg1: i32) -> (i32, i32) {
    %c0_i32 = arith.constant 0 : i32
    %c0_i32_0 = arith.constant 0 : i32
    return %arg0, %c0_i32 : i32, i32
  }
  func.func @transform_2(%arg0: i32, %arg1: i32) -> (i32, i32) {
    %c0_i32 = arith.constant 0 : i32
    %c0_i32_0 = arith.constant 0 : i32
    return %arg0, %c0_i32 : i32, i32
  }
}

module attributes {stable_mosaic.version = 11 : i64} {
  func.func @kernel(%arg0: i32, %arg1: i32, %arg2: i32, %arg3: memref<1x4x1408xbf16, #tpu.memory_space<vmem>>, %arg4: memref<1x4x1xf32, #tpu.memory_space<vmem>>, %arg5: memref<1x4x1xf32, #tpu.memory_space<vmem>>, %arg6: memref<1x1408xbf16, #tpu.memory_space<vmem>>, %arg7: memref<8x108xbf16, #tpu.memory_space<vmem>>, %arg8: memref<1x8x128xf32, #tpu.memory_space<vmem>>, %arg9: memref<108x128xbf16, #tpu.memory_space<vmem>>) attributes {dimension_semantics = [#tpu.dimension_semantics<parallel>, #tpu.dimension_semantics<parallel>, #tpu.dimension_semantics<arbitrary>], iteration_bounds = array<i64: 2, 8, 1>, scalar_prefetch = 0 : i64, scratch_operands = 1 : i64, tpu.core_type = #tpu.core_type<tc>, window_params = [{transform_indices = @transform_0, window_bounds = array<i64: 1, 4, 1408>}, {transform_indices = @transform_1, window_bounds = array<i64: 1, 4, 1>}, {transform_indices = @transform_2, window_bounds = array<i64: 1, 4, 1>}, {pipeline_mode = #tpu.pipeline_mode<synchronous>, transform_indices = @transform_3, window_bounds = array<i64: 1, 1408>}, {pipeline_mode = #tpu.pipeline_mode<synchronous>, transform_indices = @transform_4, window_bounds = array<i64: 8, 108>}, {transform_indices = @transform_5, window_bounds = array<i64: 1, 8, 128>}]} {
    %c128_i32 = arith.constant 128 : i32
    %0 = arith.muli %arg1, %c128_i32 : i32
    %c128_i32_0 = arith.constant 128 : i32
    %1 = arith.muli %arg2, %c128_i32_0 : i32
    %2 = arith.addi %0, %1 : i32
    %3 = tpu.assume_multiple %2, 128 : i32
    %c0 = arith.constant 0 : index
    %c0_1 = arith.constant 0 : index
    %4 = arith.index_cast %3 : i32 to index
    %5 = vector.load %arg3[%c0, %c0_1, %4] : memref<1x4x1408xbf16, #tpu.memory_space<vmem>>, vector<1x4x512xbf16>
    %6 = vector.shape_cast %5 : vector<1x4x512xbf16> to vector<4x512xbf16>
    %7 = arith.extf %6 : vector<4x512xbf16> to vector<4x512xf32>
    %c0_2 = arith.constant 0 : index
    %8 = arith.index_cast %3 : i32 to index
    %9 = vector.load %arg6[%c0_2, %8] : memref<1x1408xbf16, #tpu.memory_space<vmem>>, vector<1x512xbf16>
    %10 = arith.extf %9 : vector<1x512xbf16> to vector<1x512xf32>
    %c0_3 = arith.constant 0 : index
    %c0_4 = arith.constant 0 : index
    %c0_5 = arith.constant 0 : index
    %11 = vector.load %arg4[%c0_3, %c0_4, %c0_5] : memref<1x4x1xf32, #tpu.memory_space<vmem>>, vector<1x4x1xf32>
    %12 = vector.shape_cast %11 : vector<1x4x1xf32> to vector<4x1xf32>
    %13 = vector.broadcast %12 : vector<4x1xf32> to vector<4x512xf32>
    %14 = arith.mulf %7, %13 : vector<4x512xf32>
    %c0_6 = arith.constant 0 : index
    %c0_7 = arith.constant 0 : index
    %c0_8 = arith.constant 0 : index
    %15 = vector.load %arg5[%c0_6, %c0_7, %c0_8] : memref<1x4x1xf32, #tpu.memory_space<vmem>>, vector<1x4x1xf32>
    %16 = vector.shape_cast %15 : vector<1x4x1xf32> to vector<4x1xf32>
    %17 = vector.broadcast %16 : vector<4x1xf32> to vector<4x512xf32>
    %18 = arith.addf %14, %17 : vector<4x512xf32>
    %cst = arith.constant 0.000000e+00 : f32
    %19 = vector.broadcast %cst : f32 to vector<4x512xf32>
    %20 = arith.maximumf %18, %19 : vector<4x512xf32>
    %21 = vector.broadcast %10 : vector<1x512xf32> to vector<4x512xf32>
    %22 = arith.mulf %20, %21 : vector<4x512xf32>
    %23 = arith.truncf %22 : vector<4x512xf32> to vector<4x512xbf16>
    %24 = vector.extract_strided_slice %23 {offsets = [0, 0], sizes = [4, 384], strides = [1, 1]} : vector<4x512xbf16> to vector<4x384xbf16>
    %25 = vector.extract_strided_slice %23 {offsets = [0, 1], sizes = [4, 384], strides = [1, 1]} : vector<4x512xbf16> to vector<4x384xbf16>
    %26 = vector.extract_strided_slice %23 {offsets = [0, 2], sizes = [4, 384], strides = [1, 1]} : vector<4x512xbf16> to vector<4x384xbf16>
    %27 = vector.extract_strided_slice %23 {offsets = [0, 10], sizes = [4, 384], strides = [1, 1]} : vector<4x512xbf16> to vector<4x384xbf16>
    %28 = vector.extract_strided_slice %23 {offsets = [0, 11], sizes = [4, 384], strides = [1, 1]} : vector<4x512xbf16> to vector<4x384xbf16>
    %29 = vector.extract_strided_slice %23 {offsets = [0, 12], sizes = [4, 384], strides = [1, 1]} : vector<4x512xbf16> to vector<4x384xbf16>
    %30 = vector.extract_strided_slice %23 {offsets = [0, 20], sizes = [4, 384], strides = [1, 1]} : vector<4x512xbf16> to vector<4x384xbf16>
    %31 = vector.extract_strided_slice %23 {offsets = [0, 21], sizes = [4, 384], strides = [1, 1]} : vector<4x512xbf16> to vector<4x384xbf16>
    %32 = vector.extract_strided_slice %23 {offsets = [0, 22], sizes = [4, 384], strides = [1, 1]} : vector<4x512xbf16> to vector<4x384xbf16>
    %33 = vector.extract_strided_slice %24 {offsets = [0, 0], sizes = [4, 128], strides = [1, 1]} : vector<4x384xbf16> to vector<4x128xbf16>
    %c0_9 = arith.constant 0 : index
    %c0_10 = arith.constant 0 : index
    %34 = vector.load %arg9[%c0_9, %c0_10] : memref<108x128xbf16, #tpu.memory_space<vmem>>, vector<4x128xbf16>
    tpu.vector_store %arg9[%c0_9, %c0_10], %33 {strides = array<i32>} : memref<108x128xbf16, #tpu.memory_space<vmem>>, vector<4x128xbf16>,
    %35 = vector.extract_strided_slice %25 {offsets = [0, 0], sizes = [4, 128], strides = [1, 1]} : vector<4x384xbf16> to vector<4x128xbf16>
    %c4 = arith.constant 4 : index
    %c0_11 = arith.constant 0 : index
    %36 = vector.load %arg9[%c4, %c0_11] : memref<108x128xbf16, #tpu.memory_space<vmem>>, vector<4x128xbf16>
    tpu.vector_store %arg9[%c4, %c0_11], %35 {strides = array<i32>} : memref<108x128xbf16, #tpu.memory_space<vmem>>, vector<4x128xbf16>,
    %37 = vector.extract_strided_slice %26 {offsets = [0, 0], sizes = [4, 128], strides = [1, 1]} : vector<4x384xbf16> to vector<4x128xbf16>
    %c8 = arith.constant 8 : index
    %c0_12 = arith.constant 0 : index
    %38 = vector.load %arg9[%c8, %c0_12] : memref<108x128xbf16, #tpu.memory_space<vmem>>, vector<4x128xbf16>
    tpu.vector_store %arg9[%c8, %c0_12], %37 {strides = array<i32>} : memref<108x128xbf16, #tpu.memory_space<vmem>>, vector<4x128xbf16>,
    %39 = vector.extract_strided_slice %27 {offsets = [0, 0], sizes = [4, 128], strides = [1, 1]} : vector<4x384xbf16> to vector<4x128xbf16>
    %c12 = arith.constant 12 : index
    %c0_13 = arith.constant 0 : index
    %40 = vector.load %arg9[%c12, %c0_13] : memref<108x128xbf16, #tpu.memory_space<vmem>>, vector<4x128xbf16>
    tpu.vector_store %arg9[%c12, %c0_13], %39 {strides = array<i32>} : memref<108x128xbf16, #tpu.memory_space<vmem>>, vector<4x128xbf16>,
    %41 = vector.extract_strided_slice %28 {offsets = [0, 0], sizes = [4, 128], strides = [1, 1]} : vector<4x384xbf16> to vector<4x128xbf16>
    %c16 = arith.constant 16 : index
    %c0_14 = arith.constant 0 : index
    %42 = vector.load %arg9[%c16, %c0_14] : memref<108x128xbf16, #tpu.memory_space<vmem>>, vector<4x128xbf16>
    tpu.vector_store %arg9[%c16, %c0_14], %41 {strides = array<i32>} : memref<108x128xbf16, #tpu.memory_space<vmem>>, vector<4x128xbf16>,
    %43 = vector.extract_strided_slice %29 {offsets = [0, 0], sizes = [4, 128], strides = [1, 1]} : vector<4x384xbf16> to vector<4x128xbf16>
    %c20 = arith.constant 20 : index
    %c0_15 = arith.constant 0 : index
    %44 = vector.load %arg9[%c20, %c0_15] : memref<108x128xbf16, #tpu.memory_space<vmem>>, vector<4x128xbf16>
    tpu.vector_store %arg9[%c20, %c0_15], %43 {strides = array<i32>} : memref<108x128xbf16, #tpu.memory_space<vmem>>, vector<4x128xbf16>,
    %45 = vector.extract_strided_slice %30 {offsets = [0, 0], sizes = [4, 128], strides = [1, 1]} : vector<4x384xbf16> to vector<4x128xbf16>
    %c24 = arith.constant 24 : index
    %c0_16 = arith.constant 0 : index
    %46 = vector.load %arg9[%c24, %c0_16] : memref<108x128xbf16, #tpu.memory_space<vmem>>, vector<4x128xbf16>
    tpu.vector_store %arg9[%c24, %c0_16], %45 {strides = array<i32>} : memref<108x128xbf16, #tpu.memory_space<vmem>>, vector<4x128xbf16>,
    %47 = vector.extract_strided_slice %31 {offsets = [0, 0], sizes = [4, 128], strides = [1, 1]} : vector<4x384xbf16> to vector<4x128xbf16>
    %c28 = arith.constant 28 : index
    %c0_17 = arith.constant 0 : index
    %48 = vector.load %arg9[%c28, %c0_17] : memref<108x128xbf16, #tpu.memory_space<vmem>>, vector<4x128xbf16>
    tpu.vector_store %arg9[%c28, %c0_17], %47 {strides = array<i32>} : memref<108x128xbf16, #tpu.memory_space<vmem>>, vector<4x128xbf16>,
    %49 = vector.extract_strided_slice %32 {offsets = [0, 0], sizes = [4, 128], strides = [1, 1]} : vector<4x384xbf16> to vector<4x128xbf16>
    %c32 = arith.constant 32 : index
    %c0_18 = arith.constant 0 : index
    %50 = vector.load %arg9[%c32, %c0_18] : memref<108x128xbf16, #tpu.memory_space<vmem>>, vector<4x128xbf16>
    tpu.vector_store %arg9[%c32, %c0_18], %49 {strides = array<i32>} : memref<108x128xbf16, #tpu.memory_space<vmem>>, vector<4x128xbf16>,
    %51 = vector.extract_strided_slice %24 {offsets = [0, 128], sizes = [4, 128], strides = [1, 1]} : vector<4x384xbf16> to vector<4x128xbf16>
    %c36 = arith.constant 36 : index
    %c0_19 = arith.constant 0 : index
    %52 = vector.load %arg9[%c36, %c0_19] : memref<108x128xbf16, #tpu.memory_space<vmem>>, vector<4x128xbf16>
    tpu.vector_store %arg9[%c36, %c0_19], %51 {strides = array<i32>} : memref<108x128xbf16, #tpu.memory_space<vmem>>, vector<4x128xbf16>,
    %53 = vector.extract_strided_slice %25 {offsets = [0, 128], sizes = [4, 128], strides = [1, 1]} : vector<4x384xbf16> to vector<4x128xbf16>
    %c40 = arith.constant 40 : index
    %c0_20 = arith.constant 0 : index
    %54 = vector.load %arg9[%c40, %c0_20] : memref<108x128xbf16, #tpu.memory_space<vmem>>, vector<4x128xbf16>
    tpu.vector_store %arg9[%c40, %c0_20], %53 {strides = array<i32>} : memref<108x128xbf16, #tpu.memory_space<vmem>>, vector<4x128xbf16>,
    %55 = vector.extract_strided_slice %26 {offsets = [0, 128], sizes = [4, 128], strides = [1, 1]} : vector<4x384xbf16> to vector<4x128xbf16>
    %c44 = arith.constant 44 : index
    %c0_21 = arith.constant 0 : index
    %56 = vector.load %arg9[%c44, %c0_21] : memref<108x128xbf16, #tpu.memory_space<vmem>>, vector<4x128xbf16>
    tpu.vector_store %arg9[%c44, %c0_21], %55 {strides = array<i32>} : memref<108x128xbf16, #tpu.memory_space<vmem>>, vector<4x128xbf16>,
    %57 = vector.extract_strided_slice %27 {offsets = [0, 128], sizes = [4, 128], strides = [1, 1]} : vector<4x384xbf16> to vector<4x128xbf16>
    %c48 = arith.constant 48 : index
    %c0_22 = arith.constant 0 : index
    %58 = vector.load %arg9[%c48, %c0_22] : memref<108x128xbf16, #tpu.memory_space<vmem>>, vector<4x128xbf16>
    tpu.vector_store %arg9[%c48, %c0_22], %57 {strides = array<i32>} : memref<108x128xbf16, #tpu.memory_space<vmem>>, vector<4x128xbf16>,
    %59 = vector.extract_strided_slice %28 {offsets = [0, 128], sizes = [4, 128], strides = [1, 1]} : vector<4x384xbf16> to vector<4x128xbf16>
    %c52 = arith.constant 52 : index
    %c0_23 = arith.constant 0 : index
    %60 = vector.load %arg9[%c52, %c0_23] : memref<108x128xbf16, #tpu.memory_space<vmem>>, vector<4x128xbf16>
    tpu.vector_store %arg9[%c52, %c0_23], %59 {strides = array<i32>} : memref<108x128xbf16, #tpu.memory_space<vmem>>, vector<4x128xbf16>,
    %61 = vector.extract_strided_slice %29 {offsets = [0, 128], sizes = [4, 128], strides = [1, 1]} : vector<4x384xbf16> to vector<4x128xbf16>
    %c56 = arith.constant 56 : index
    %c0_24 = arith.constant 0 : index
    %62 = vector.load %arg9[%c56, %c0_24] : memref<108x128xbf16, #tpu.memory_space<vmem>>, vector<4x128xbf16>
    tpu.vector_store %arg9[%c56, %c0_24], %61 {strides = array<i32>} : memref<108x128xbf16, #tpu.memory_space<vmem>>, vector<4x128xbf16>,
    %63 = vector.extract_strided_slice %30 {offsets = [0, 128], sizes = [4, 128], strides = [1, 1]} : vector<4x384xbf16> to vector<4x128xbf16>
    %c60 = arith.constant 60 : index
    %c0_25 = arith.constant 0 : index
    %64 = vector.load %arg9[%c60, %c0_25] : memref<108x128xbf16, #tpu.memory_space<vmem>>, vector<4x128xbf16>
    tpu.vector_store %arg9[%c60, %c0_25], %63 {strides = array<i32>} : memref<108x128xbf16, #tpu.memory_space<vmem>>, vector<4x128xbf16>,
    %65 = vector.extract_strided_slice %31 {offsets = [0, 128], sizes = [4, 128], strides = [1, 1]} : vector<4x384xbf16> to vector<4x128xbf16>
    %c64 = arith.constant 64 : index
    %c0_26 = arith.constant 0 : index
    %66 = vector.load %arg9[%c64, %c0_26] : memref<108x128xbf16, #tpu.memory_space<vmem>>, vector<4x128xbf16>
    tpu.vector_store %arg9[%c64, %c0_26], %65 {strides = array<i32>} : memref<108x128xbf16, #tpu.memory_space<vmem>>, vector<4x128xbf16>,
    %67 = vector.extract_strided_slice %32 {offsets = [0, 128], sizes = [4, 128], strides = [1, 1]} : vector<4x384xbf16> to vector<4x128xbf16>
    %c68 = arith.constant 68 : index
    %c0_27 = arith.constant 0 : index
    %68 = vector.load %arg9[%c68, %c0_27] : memref<108x128xbf16, #tpu.memory_space<vmem>>, vector<4x128xbf16>
    tpu.vector_store %arg9[%c68, %c0_27], %67 {strides = array<i32>} : memref<108x128xbf16, #tpu.memory_space<vmem>>, vector<4x128xbf16>,
    %69 = vector.extract_strided_slice %24 {offsets = [0, 256], sizes = [4, 128], strides = [1, 1]} : vector<4x384xbf16> to vector<4x128xbf16>
    %c72 = arith.constant 72 : index
    %c0_28 = arith.constant 0 : index
    %70 = vector.load %arg9[%c72, %c0_28] : memref<108x128xbf16, #tpu.memory_space<vmem>>, vector<4x128xbf16>
    tpu.vector_store %arg9[%c72, %c0_28], %69 {strides = array<i32>} : memref<108x128xbf16, #tpu.memory_space<vmem>>, vector<4x128xbf16>,
    %71 = vector.extract_strided_slice %25 {offsets = [0, 256], sizes = [4, 128], strides = [1, 1]} : vector<4x384xbf16> to vector<4x128xbf16>
    %c76 = arith.constant 76 : index
    %c0_29 = arith.constant 0 : index
    %72 = vector.load %arg9[%c76, %c0_29] : memref<108x128xbf16, #tpu.memory_space<vmem>>, vector<4x128xbf16>
    tpu.vector_store %arg9[%c76, %c0_29], %71 {strides = array<i32>} : memref<108x128xbf16, #tpu.memory_space<vmem>>, vector<4x128xbf16>,
    %73 = vector.extract_strided_slice %26 {offsets = [0, 256], sizes = [4, 128], strides = [1, 1]} : vector<4x384xbf16> to vector<4x128xbf16>
    %c80 = arith.constant 80 : index
    %c0_30 = arith.constant 0 : index
    %74 = vector.load %arg9[%c80, %c0_30] : memref<108x128xbf16, #tpu.memory_space<vmem>>, vector<4x128xbf16>
    tpu.vector_store %arg9[%c80, %c0_30], %73 {strides = array<i32>} : memref<108x128xbf16, #tpu.memory_space<vmem>>, vector<4x128xbf16>,
    %75 = vector.extract_strided_slice %27 {offsets = [0, 256], sizes = [4, 128], strides = [1, 1]} : vector<4x384xbf16> to vector<4x128xbf16>
    %c84 = arith.constant 84 : index
    %c0_31 = arith.constant 0 : index
    %76 = vector.load %arg9[%c84, %c0_31] : memref<108x128xbf16, #tpu.memory_space<vmem>>, vector<4x128xbf16>
    tpu.vector_store %arg9[%c84, %c0_31], %75 {strides = array<i32>} : memref<108x128xbf16, #tpu.memory_space<vmem>>, vector<4x128xbf16>,
    %77 = vector.extract_strided_slice %28 {offsets = [0, 256], sizes = [4, 128], strides = [1, 1]} : vector<4x384xbf16> to vector<4x128xbf16>
    %c88 = arith.constant 88 : index
    %c0_32 = arith.constant 0 : index
    %78 = vector.load %arg9[%c88, %c0_32] : memref<108x128xbf16, #tpu.memory_space<vmem>>, vector<4x128xbf16>
    tpu.vector_store %arg9[%c88, %c0_32], %77 {strides = array<i32>} : memref<108x128xbf16, #tpu.memory_space<vmem>>, vector<4x128xbf16>,
    %79 = vector.extract_strided_slice %29 {offsets = [0, 256], sizes = [4, 128], strides = [1, 1]} : vector<4x384xbf16> to vector<4x128xbf16>
    %c92 = arith.constant 92 : index
    %c0_33 = arith.constant 0 : index
    %80 = vector.load %arg9[%c92, %c0_33] : memref<108x128xbf16, #tpu.memory_space<vmem>>, vector<4x128xbf16>
    tpu.vector_store %arg9[%c92, %c0_33], %79 {strides = array<i32>} : memref<108x128xbf16, #tpu.memory_space<vmem>>, vector<4x128xbf16>,
    %81 = vector.extract_strided_slice %30 {offsets = [0, 256], sizes = [4, 128], strides = [1, 1]} : vector<4x384xbf16> to vector<4x128xbf16>
    %c96 = arith.constant 96 : index
    %c0_34 = arith.constant 0 : index
    %82 = vector.load %arg9[%c96, %c0_34] : memref<108x128xbf16, #tpu.memory_space<vmem>>, vector<4x128xbf16>
    tpu.vector_store %arg9[%c96, %c0_34], %81 {strides = array<i32>} : memref<108x128xbf16, #tpu.memory_space<vmem>>, vector<4x128xbf16>,
    %83 = vector.extract_strided_slice %31 {offsets = [0, 256], sizes = [4, 128], strides = [1, 1]} : vector<4x384xbf16> to vector<4x128xbf16>
    %c100 = arith.constant 100 : index
    %c0_35 = arith.constant 0 : index
    %84 = vector.load %arg9[%c100, %c0_35] : memref<108x128xbf16, #tpu.memory_space<vmem>>, vector<4x128xbf16>
    tpu.vector_store %arg9[%c100, %c0_35], %83 {strides = array<i32>} : memref<108x128xbf16, #tpu.memory_space<vmem>>, vector<4x128xbf16>,
    %85 = vector.extract_strided_slice %32 {offsets = [0, 256], sizes = [4, 128], strides = [1, 1]} : vector<4x384xbf16> to vector<4x128xbf16>
    %c104 = arith.constant 104 : index
    %c0_36 = arith.constant 0 : index
    %86 = vector.load %arg9[%c104, %c0_36] : memref<108x128xbf16, #tpu.memory_space<vmem>>, vector<4x128xbf16>
    tpu.vector_store %arg9[%c104, %c0_36], %85 {strides = array<i32>} : memref<108x128xbf16, #tpu.memory_space<vmem>>, vector<4x128xbf16>,
    %c0_37 = arith.constant 0 : index
    %c0_38 = arith.constant 0 : index
    %87 = vector.load %arg7[%c0_37, %c0_38] : memref<8x108xbf16, #tpu.memory_space<vmem>>, vector<8x108xbf16>
    %c0_39 = arith.constant 0 : index
    %c0_40 = arith.constant 0 : index
    %88 = vector.load %arg9[%c0_39, %c0_40] : memref<108x128xbf16, #tpu.memory_space<vmem>>, vector<108x128xbf16>
    %cst_41 = arith.constant dense<0.000000e+00> : vector<8x128xf32>
    %89 = tpu.matmul %87, %88, %cst_41 {dimension_numbers = #tpu.dot_dimension_numbers<[1], [0], [0], [1], [0, 0, 1, 1], [], []>} : vector<8x108xbf16>, vector<108x128xbf16>, vector<8x128xf32> -> vector<8x128xf32>
    %c0_42 = arith.constant 0 : index
    %c0_43 = arith.constant 0 : index
    %c0_44 = arith.constant 0 : index
    %90 = vector.load %arg8[%c0_42, %c0_43, %c0_44] : memref<1x8x128xf32, #tpu.memory_space<vmem>>, vector<1x8x128xf32>
    %91 = vector.shape_cast %90 : vector<1x8x128xf32> to vector<8x128xf32>
    %92 = vector.shape_cast %89 : vector<8x128xf32> to vector<1x8x128xf32>
    tpu.vector_store %arg8[%c0_42, %c0_43, %c0_44], %92 {strides = array<i32>} : memref<1x8x128xf32, #tpu.memory_space<vmem>>, vector<1x8x128xf32>,
    return
  }
  func.func @transform_0(%arg0: i32, %arg1: i32, %arg2: i32) -> (i32, i32, i32) {
    %c0_i32 = arith.constant 0 : i32
    %c0_i32_0 = arith.constant 0 : i32
    %c0_i32_1 = arith.constant 0 : i32
    return %arg0, %c0_i32, %c0_i32_0 : i32, i32, i32
  }
  func.func @transform_1(%arg0: i32, %arg1: i32, %arg2: i32) -> (i32, i32, i32) {
    %c0_i32 = arith.constant 0 : i32
    %c0_i32_0 = arith.constant 0 : i32
    %c0_i32_1 = arith.constant 0 : i32
    return %arg0, %c0_i32, %c0_i32_0 : i32, i32, i32
  }
  func.func @transform_2(%arg0: i32, %arg1: i32, %arg2: i32) -> (i32, i32, i32) {
    %c0_i32 = arith.constant 0 : i32
    %c0_i32_0 = arith.constant 0 : i32
    %c0_i32_1 = arith.constant 0 : i32
    return %arg0, %c0_i32, %c0_i32_0 : i32, i32, i32
  }
  func.func @transform_3(%arg0: i32, %arg1: i32, %arg2: i32) -> (i32, i32) {
    %c0_i32 = arith.constant 0 : i32
    %c0_i32_0 = arith.constant 0 : i32
    %c0_i32_1 = arith.constant 0 : i32
    return %c0_i32, %c0_i32_0 : i32, i32
  }
  func.func @transform_4(%arg0: i32, %arg1: i32, %arg2: i32) -> (i32, i32) {
    %c0_i32 = arith.constant 0 : i32
    %c0_i32_0 = arith.constant 0 : i32
    %c0_i32_1 = arith.constant 0 : i32
    return %c0_i32, %c0_i32_0 : i32, i32
  }
  func.func @transform_5(%arg0: i32, %arg1: i32, %arg2: i32) -> (i32, i32, i32) {
    %c1_i32 = arith.constant 1 : i32
    %0 = arith.muli %arg1, %c1_i32 : i32
    %1 = arith.addi %0, %arg2 : i32
    %c0_i32 = arith.constant 0 : i32
    %c0_i32_0 = arith.constant 0 : i32
    return %arg0, %c0_i32, %1 : i32, i32, i32
  }
}

</mosaic_0001>

<bundles_post_ra>
// kernel: conv_block_forward.2
= control target key start
LH: loop header
LB: loop body
LE: loop exit
PB: predicated region body
PF: predicated region fallthrough
CT: control target
= control target key end

     0   :  { %vm14_vm0 = vcmask 7168   ;;  %v69_v3 = vmov 0.0   ;;  %s133_s0 = inlined_call_operand.vmem [shape: f32[8,512], index: 0, kind: input, shape index: {}]   ;;  %s134_s1 = inlined_call_operand.vmem [shape: f32[8,1], index: 1, kind: output, shape index: {0}]   ;;  %s135_s2 = inlined_call_operand.vmem [shape: f32[8,1], index: 2, kind: output, shape index: {1}]  }
   0x1   :  { %v17_v0 = vld [vmem:[%s133_s0] sm:$0xff]  ;;  %v18_v1 = vld [vmem:[%s133_s0 + $0x8] sm:$0xff]  ;;  %v19_v2 = vld [vmem:[%s133_s0 + $0x10] sm:$0xff]  ;;  %15 = vst.msk [vmem:[%s134_s1] sm:$0xff] %vm14_vm0, %v69_v3 }
   0x2   :  { %v22_v4 = vadd.f32 %v18_v1, %v17_v0  ;;  %v31_v5 = vmul.f32 %v17_v0, %v17_v0  ;;  %v32_v6 = vmul.f32 %v18_v1, %v18_v1  ;;  %v33_v7 = vmul.f32 %v19_v2, %v19_v2  ;;  %v20_v8 = vld [vmem:[%s133_s0 + $0x18] sm:$0xff]  ;;  %16 = vst.msk [vmem:[%s135_s2] sm:$0xff] %vm14_vm0, %v69_v3 }
   0x3   :  { %v34_v10 = vmul.f32 %v20_v8, %v20_v8 }
   0x4   :  { %v23_v9 = vadd.f32 %v22_v4, %v19_v2  ;;  %v35_v11 = vadd.f32 %v32_v6, %v31_v5 }
   0x6   :  { %v24_v12 = vadd.f32 %v23_v9, %v20_v8  ;;  %v36_v13 = vadd.f32 %v35_v11, %v33_v7 }
   0x8   :  { %25 = vadd.xlane.f32.xlu0 %v24_v12  ;;  %v37_v14 = vadd.f32 %v36_v13, %v34_v10  ;;  %v21_v15 = vld [vmem:[%s134_s1] sm:$0xff] }
   0x9   :  { %v30_v18 = vld [vmem:[%s135_s2] sm:$0xff] }
   0xc   :  { %38 = vadd.xlane.f32.xlu0 %v37_v14 }
  0x95   :  { %v26_v16 = vpop.xlane.xlu0 %25 }
  0x96   :  { %v27_v17 = vadd.f32 %v26_v16, %v21_v15 }
  0x98   :  { %29 = vst.msk [vmem:[%s134_s1] sm:$0xff] %vm14_vm0, %v27_v17 }
  0x99   :  { %v39_v19 = vpop.xlane.xlu0 %38 }
  0x9a   :  { %v40_v20 = vadd.f32 %v39_v19, %v30_v18 }
  0x9c   :  { %41 = vst.msk [vmem:[%s135_s2] sm:$0xff] %vm14_vm0, %v40_v20 }
  0x9f   :  { %v45_v21 = vld [vmem:[%s134_s1] sm:$0xff] }
  0xa0   :  { %v47_v22 = vmul.f32 0.001953125, %v45_v21 }
  0xa2   :  { %v49_v24 = vmul.f32 %v47_v22, %v47_v22  ;;  %v55_v29 = vsub.f32 0.0, %v47_v22 }
  0xa3   :  { %v46_v23 = vld [vmem:[%s135_s2] sm:$0xff] }
  0xa4   :  { %v48_v25 = vmul.f32 0.001953125, %v46_v23 }
  0xa6   :  { %v50_v26 = vsub.f32 %v48_v25, %v49_v24 }
  0xa8   :  { %v51_v27 = vmax.f32 %v50_v26, 0.0 }
  0xaa   :  { %v52_v28 = vadd.f32 1e-05, %v51_v27 }
  0xac   :  { %67 = vrsqrt.f32 %v52_v28 }
  0xb6   :  { %v68_v30 = vpop.eup %67 }
  0xb7   :  { %54 = vst.msk [vmem:[%s134_s1] sm:$0xff] %vm14_vm0, %v68_v30  ;;  %v56_v31 = vmul.f32 %v68_v30, %v55_v29 }
  0xb9   :  { %57 = vst.msk [vmem:[%s135_s2] sm:$0xff] %vm14_vm0, %v56_v31 }

// kernel: conv_block_forward.3
= control target key start
LH: loop header
LB: loop body
LE: loop exit
PB: predicated region body
PF: predicated region fallthrough
CT: control target
= control target key end

     0   :  { %s984_s18 = smov 0   ;;  %s986_s19 = smov 0   ;;  %s1090_s0 = inlined_call_operand.vmem [shape: bf16[2,4,1408], index: 0, kind: input, shape index: {}]   ;;  %s1091_s1 = inlined_call_operand.vmem [shape: f32[2,4,1], index: 1, kind: input, shape index: {}]   ;;  %s1092_s2 = inlined_call_operand.vmem [shape: f32[2,4,1], index: 2, kind: input, shape index: {}]   ;;  %s1093_s3 = inlined_call_operand.vmem [shape: bf16[1,1408], index: 3, kind: input, shape index: {}]   ;;  %s1094_s4 = inlined_call_operand.vmem [shape: bf16[8,108], index: 4, kind: input, shape index: {}]   ;;  %s1095_s5 = inlined_call_operand.vmem [shape: f32[2,8,1024], index: 5, kind: output, shape index: {}]  }
   0x1   :  { %s988_s20 = smov 0   ;;  %s990_s21 = smov 0  }
   0x2   :  { %s992_s22 = smov 0  }
   0x3 LB: > { %s30_s23 = sadd.s32 1, %s932_s20  ;;  %s34_s24 = sadd.s32 1, %s936_s21  ;;  %s940_s22 = sphi %s992_s22, %s15_s22   ;;  %s936_s21 = sphi %s990_s21, %s1099_s21   ;;  %s932_s20 = sphi %s988_s20, %s1098_s20   ;;  %s928_s19 = sphi %s986_s19, %s1097_s19   ;;  %s924_s18 = sphi %s984_s18, %s1096_s18  }
   0x4   : > { %p32_p0 = scmp.ge.s32.totalorder %s30_s23, 8  ;;  %p789_p1 = scmp.ge.s32.totalorder %s940_s22, 1 }
   0x5   : > { %p228_p2 = scmp.lt.s32.totalorder %s940_s22, 17 }
   0x6   : > { %s1101_s23 = smov (%p32_p0, %s30_s23), 0  ;;  %s1103_s24 = smov (!%p32_p0, %s34_s24), %s936_s21 }
   0x7   : > { %p229_p3 = pnand %p789_p1, %p228_p2  ;;  %p36_p4 = scmp.ge.s32.totalorder %s1103_s24, 2 }
   0x8   : > { %p268_p5 = scmp.lt.s32.totalorder (!%p229_p3), %s928_s19, 1  ;;  %v942_v0 = vmov (!%p229_p3), 0   ;;  %s795_s7 = sshll.u32 (!%p229_p3), %s924_s18, 7  ;;  %v943_v3 = vmov (!%p229_p3), 839922192   ;;  %v313_v5 = vlaneseq (!%p229_p3)  ;;  %v951_v49 = vmov (!%p229_p3), 0.0  }
   0x9   : > { %s1105_s24 = smov (%p36_p4, %s1103_s24), 0  ;;  %232 = sbr.rel (%p229_p3) target bundleno = 557 (0x22d), region = 40 }
   0xa   : > { %894 = vset.pattern.permute.xlu0 (!%p229_p3), %v942_v0  ;;  %s295_s8 = sshra.s32 (!%p229_p3), %s795_s7, 7  ;;  %v311_v4 = vunpack.c.l.s4 (!%p229_p3), %v943_v3  ;;  %v314_v8 = vshrl.u32 (!%p229_p3), %v313_v5, 7  ;;  %s945_s26 = smov (!%p229_p3), 126   ;;  %823 = vmatprep.subr.bf16.mxu0 (!%p229_p3), %v951_v49  ;;  %vm953_vm0 = vmmov (!%p229_p3), 0   ;;  %vm404_vm1 = vcmask (!%p229_p3), 1039360  }
   0xb   : > { %s302_s11 = scalar_lea.vmem (!%p229_p3), %s1093_s3, %s295_s8  ;;  %s796_s13 = sshll.u32 (!%p229_p3), %s295_s8, 1  ;;  %837 = vmatprep.mubr.msk.bf16.mxu0 (!%p229_p3), %vm953_vm0, %v951_v49  ;;  %vm411_vm2 = vcmask (!%p229_p3), 1031168   ;;  %vm418_vm3 = vcmask (!%p229_p3), 965632   ;;  %vm425_vm4 = vcmask (!%p229_p3), 957440   ;;  %vm432_vm5 = vcmask (!%p229_p3), 949248  }
   0xc   : > { %v303_v6 = vld [vmem:[%s302_s11] sm:$0xf] (!%p229_p3)  ;;  %v312_v7 = vunpack.c.0.s8 (!%p229_p3), %v311_v4  ;;  %v340_v10 = vsub.s32 (!%p229_p3), 0, %v314_v8  ;;  %v344_v11 = vsub.s32 (!%p229_p3), 2, %v314_v8  ;;  %v348_v12 = vsub.s32 (!%p229_p3), 4, %v314_v8  ;;  %s946_s27 = smov (!%p229_p3), 118  }
   0xd   : > { %v304_v9 = vunpack.c.l.bf16 (!%p229_p3), %v303_v6  ;;  %v352_v13 = vsub.s32 (!%p229_p3), 6, %v314_v8  ;;  %s948_s29 = smov (!%p229_p3), 116   ;;  %s949_s30 = smov (!%p229_p3), 108   ;;  %vm439_vm6 = vcmask (!%p229_p3), 883712   ;;  %vm453_vm7 = vcmask (!%p229_p3), 867328  }
   0xe   : > { %v315_v14 = vsub.s32 (!%p229_p3), %v312_v7, %v314_v8  ;;  %s952_s7 = smov (!%p229_p3), 107   ;;  %vm446_vm8 = vcmask (!%p229_p3), 875520   ;;  %vm626_vm9 = vcmask (!%p229_p3), 1045504   ;;  %p284_p6 = scmp.lt.s32.totalorder (!%p229_p3), %s924_s18, 7 }
   0xf   : > { %v341_v16 = vrot.slane (!%p229_p3), %v304_v9, %v340_v10  ;;  %v345_v17 = vrot.slane (!%p229_p3), %v304_v9, %v344_v11  ;;  %v349_v18 = vrot.slane (!%p229_p3), %v304_v9, %v348_v12  ;;  %v353_v19 = vrot.slane (!%p229_p3), %v304_v9, %v352_v13 }
  0x10   : > { %s1107_s19 = smov (!%p268_p5, %s928_s19), 1  ;;  %s1109_s18 = smov (!%p284_p6, %s924_s18), 7 }
  0x11   : > { %s791_s25 = sshll.u32 %s1107_s19, 2  ;;  %s841_s12 = smul.u32 22, %s1107_s19  ;;  %v361_v24 = vrot.slane %v341_v16, %v340_v10  ;;  %v365_v25 = vrot.slane %v345_v17, %v340_v10  ;;  %v369_v26 = vrot.slane %v349_v18, %v340_v10  ;;  %v373_v27 = vrot.slane %v353_v19, %v340_v10 }
  0x12   : > { %s276_s28 = scalar_lea.vmem %s1091_s1, %s791_s25  ;;  %s280_s6 = scalar_lea.vmem %s1092_s2, %s791_s25 }
  0x13   : > { %v305_v1 = vld [vmem:[%s276_s28] sm:$0xf]  ;;  %s272_s16 = scalar_lea.vmem %s1090_s0, %s841_s12  ;;  %v378_v32 = vcombine.low %v361_v24, %v365_v25  ;;  %v379_v33 = vcombine.low %v369_v26, %v373_v27  ;;  %s944_s25 = smov 127  }
  0x14   : > { %308 = vperm.xlu0 %894, %v305_v1   ;;  %v320_v2 = vld [vmem:[%s280_s6] sm:$0xf]  ;;  %s298_s17 = scalar_lea.vmem %s272_s16, %s796_s13  ;;  %s947_s28 = smov 117  }
  0x15   : > { %v299_v15 = vld [vmem:[%s298_s17] sm:$0xff]  ;;  %s950_s6 = smov 106   ;;  %s793_s10 = sshll.u32 %s1107_s19, 3 }
  0x16   : > { %v300_v21 = vunpack.c.l.bf16 %v299_v15  ;;  %v301_v22 = vunpack.c.h.bf16 %v299_v15  ;;  %s287_s11 = sadd.s32 %s793_s10, %s1109_s18 }
  0x17   : > { %s794_s12 = sshll.u32 %s287_s11, 3 }
  0x18   : > { %323 = vperm.xlu0 %894, %v320_v2   ;;  %s289_s15 = scalar_lea.vmem %s1095_s5, %s794_s12 }
  0x93   : > { %v309_v20 = vpop.permute.xlu0 %308 }
  0x94   : > { %v316_v23 = vrot.slane %v309_v20, %v315_v14 }
  0x96   : > { %v318_v29 = vmul.f32 %v316_v23, %v300_v21  ;;  %v319_v30 = vmul.f32 %v316_v23, %v301_v22 }
  0x97   : > { %v324_v28 = vpop.permute.xlu0 %323 }
  0x98   : > { %v331_v31 = vrot.slane %v324_v28, %v315_v14 }
  0x9a   : > { %v333_v34 = vadd.f32 %v331_v31, %v318_v29  ;;  %v334_v35 = vadd.f32 %v331_v31, %v319_v30 }
  0x9c   : > { %v335_v36 = vmax.f32 %v333_v34, 0.0  ;;  %v336_v37 = vmax.f32 %v334_v35, 0.0 }
  0x9e   : > { %v382_v38 = vmul.f32 %v378_v32, %v335_v36  ;;  %v383_v39 = vmul.f32 %v379_v33, %v336_v37 }
  0xa0   : > { %v386_v40 = vcombine.high %v382_v38, %v382_v38  ;;  %v390_v41 = vpack.c.bf16 %v382_v38, %v382_v38  ;;  %v392_v42 = vpack.c.bf16 %v383_v39, %v383_v39  ;;  %v387_v48 = vcombine.high %v383_v39, %v383_v39 }
  0xa2   : > { %394 = vst [vmem:[#allocation2] sm:$0x3] %v390_v41  ;;  %v811_v43 = vpack.c.bf16 %v386_v40, %v382_v38  ;;  %v812_v44 = vpack.c.bf16 %v386_v40, %v386_v40  ;;  %513 = vst [vmem:[#allocation2 + $0x24] sm:$0x3] %v392_v42  ;;  %v813_v45 = vpack.c.bf16 %v383_v39, %v386_v40 }
  0xa3   : > { %v814_v50 = vpack.c.bf16 %v387_v48, %v383_v39 }
  0xa4   : > { %v458_v46 = vrot.slane %v812_v44, 6  ;;  %464 = vrot.lane.b32.xlu0 %v813_v45, %s944_s25  ;;  %408 = vrot.lane.b32.xlu1 %v811_v43, %s945_s26  ;;  %v400_v47 = vrot.slane %v811_v43, 6  ;;  %v470_v52 = vrot.slane %v813_v45, 6 }
  0xa5   : > { %v517_v51 = vrot.slane %v814_v50, 6 }
  0xa6   : > { %460 = vst [vmem:[#allocation2 + $0x10] sm:$0xc] %v458_v46 }
  0xa8   : > { %477 = vrot.lane.b32.xlu0 %v813_v45, %s946_s27  ;;  %422 = vrot.lane.b32.xlu1 %v811_v43, %s947_s28 }
  0xac   : > { %489 = vrot.lane.b32.xlu0 %v813_v45, %s948_s29  ;;  %436 = vrot.lane.b32.xlu1 %v811_v43, %s949_s30 }
  0xb0   : > { %450 = vrot.lane.b32.xlu1 %v811_v43, %s950_s6  ;;  %415 = vrot.lane.b32.xlu0 %v400_v47, %s946_s27 }
  0xb4   : > { %429 = vrot.lane.b32.xlu0 %v400_v47, %s948_s29  ;;  %401 = vrot.lane.b32.xlu1 %v400_v47, %s944_s25 }
  0xb8   : > { %443 = vrot.lane.b32.xlu0 %v400_v47, %s952_s7  ;;  %524 = vrot.lane.b32.xlu1 %v814_v50, %s945_s26 }
  0xbc   : > { %501 = vrot.lane.b32.xlu0 %v813_v45, %s952_s7  ;;  %536 = vrot.lane.b32.xlu1 %v814_v50, %s947_s28 }
  0xc0   : > { %518 = vrot.lane.b32.xlu0 %v517_v51, %s944_s25  ;;  %471 = vrot.lane.b32.xlu1 %v470_v52, %s945_s26 }
  0xc4   : > { %530 = vrot.lane.b32.xlu0 %v517_v51, %s946_s27  ;;  %483 = vrot.lane.b32.xlu1 %v470_v52, %s947_s28 }
  0xc8   : > { %542 = vrot.lane.b32.xlu0 %v517_v51, %s948_s29  ;;  %495 = vrot.lane.b32.xlu1 %v470_v52, %s949_s30 }
  0xcc   : > { %554 = vrot.lane.b32.xlu0 %v517_v51, %s952_s7  ;;  %507 = vrot.lane.b32.xlu1 %v470_v52, %s950_s6 }
  0xd0   : > { %548 = vrot.lane.b32.xlu1 %v814_v50, %s949_s30 }
  0xd4   : > { %560 = vrot.lane.b32.xlu1 %v814_v50, %s950_s6 }
 0x116   : > { %v465_v53 = vpop.permute.xlu0 %464  ;;  %v409_v54 = vpop.permute.xlu1 %408 }
 0x117   : > { %v466_v55 = vrot.slane %v465_v53, 4  ;;  %v410_v56 = vrot.slane %v409_v54, 4 }
 0x119   : > { %v467_v57 = vsel %vm404_vm1, %v465_v53, %v466_v55  ;;  %v412_v58 = vsel %vm411_vm2, %v409_v54, %v410_v56 }
 0x11a   : > { %469 = vst [vmem:[#allocation2 + $0x14] sm:$0x3] %v467_v57  ;;  %414 = vst [vmem:[#allocation2 + $0x4] sm:$0x3] %v412_v58  ;;  %v478_v59 = vpop.permute.xlu0 %477  ;;  %v423_v60 = vpop.permute.xlu1 %422 }
 0x11b   : > { %v479_v61 = vrot.slane %v478_v59, 4  ;;  %v424_v62 = vrot.slane %v423_v60, 4 }
 0x11d   : > { %v480_v63 = vsel %vm418_vm3, %v478_v59, %v479_v61  ;;  %v426_v0 = vsel %vm425_vm4, %v423_v60, %v424_v62 }
 0x11e   : > { %482 = vst [vmem:[#allocation2 + $0x18] sm:$0x3] %v480_v63  ;;  %428 = vst [vmem:[#allocation2 + $0x8] sm:$0x3] %v426_v0  ;;  %v490_v1 = vpop.permute.xlu0 %489  ;;  %v437_v2 = vpop.permute.xlu1 %436 }
 0x11f   : > { %v491_v3 = vrot.slane %v490_v1, 4  ;;  %v438_v4 = vrot.slane %v437_v2, 4 }
 0x121   : > { %v492_v5 = vsel %vm432_vm5, %v490_v1, %v491_v3  ;;  %v440_v6 = vsel %vm439_vm6, %v437_v2, %v438_v4 }
 0x122   : > { %494 = vst [vmem:[#allocation2 + $0x1c] sm:$0x3] %v492_v5  ;;  %442 = vst [vmem:[#allocation2 + $0xc] sm:$0x3] %v440_v6  ;;  %v451_v7 = vpop.permute.xlu1 %450  ;;  %v416_v8 = vpop.permute.xlu0 %415  ;;  %v566_v6 = vld [vmem:[%s1094_s4] sm:$0xf] }
 0x123   : > { %v452_v9 = vrot.slane %v451_v7, 4  ;;  %v417_v10 = vrot.slane %v416_v8, 4 }
 0x125   : > { %v454_v11 = vsel %vm453_vm7, %v451_v7, %v452_v9  ;;  %v419_v12 = vsel %vm418_vm3, %v416_v8, %v417_v10 }
 0x126   : > { %456 = vst [vmem:[#allocation2 + $0x10] sm:$0x3] %v454_v11  ;;  %421 = vst [vmem:[#allocation2 + $0x4] sm:$0xc] %v419_v12  ;;  %v430_v13 = vpop.permute.xlu0 %429  ;;  %v402_v14 = vpop.permute.xlu1 %401 }
 0x127   : > { %v431_v15 = vrot.slane %v430_v13, 4  ;;  %v403_v16 = vrot.slane %v402_v14, 4 }
 0x129   : > { %v433_v17 = vsel %vm432_vm5, %v430_v13, %v431_v15  ;;  %v405_v18 = vsel %vm404_vm1, %v402_v14, %v403_v16 }
 0x12a   : > { %435 = vst [vmem:[#allocation2 + $0x8] sm:$0xc] %v433_v17  ;;  %407 = vst [vmem:[#allocation2] sm:$0xc] %v405_v18  ;;  %v444_v19 = vpop.permute.xlu0 %443  ;;  %v525_v20 = vpop.permute.xlu1 %524 }
 0x12b   : > { %v445_v21 = vrot.slane %v444_v19, 4  ;;  %v526_v22 = vrot.slane %v525_v20, 4 }
 0x12d   : > { %v447_v23 = vsel %vm446_vm8, %v444_v19, %v445_v21  ;;  %v527_v24 = vsel %vm411_vm2, %v525_v20, %v526_v22 }
 0x12e   : > { %449 = vst [vmem:[#allocation2 + $0xc] sm:$0xc] %v447_v23  ;;  %529 = vst [vmem:[#allocation2 + $0x28] sm:$0x3] %v527_v24  ;;  %v502_v25 = vpop.permute.xlu0 %501  ;;  %v537_v26 = vpop.permute.xlu1 %536 }
 0x12f   : > { %v503_v27 = vrot.slane %v502_v25, 4  ;;  %v538_v28 = vrot.slane %v537_v26, 4 }
 0x131   : > { %v504_v29 = vsel %vm446_vm8, %v502_v25, %v503_v27  ;;  %v539_v30 = vsel %vm425_vm4, %v537_v26, %v538_v28  ;;  %v895_v31 = vld [vmem:[#allocation2] sm:$0xff]  }
 0x132   : > { %506 = vst [vmem:[#allocation2 + $0x20] sm:$0x3] %v504_v29  ;;  %541 = vst [vmem:[#allocation2 + $0x2c] sm:$0x3] %v539_v30  ;;  %v519_v32 = vpop.permute.xlu0 %518  ;;  %v472_v33 = vpop.permute.xlu1 %471  ;;  %824 = vmatpush3.bf16.msra.mxu0 %v895_v31 }
 0x133   : > { %v520_v34 = vrot.slane %v519_v32, 4  ;;  %v473_v35 = vrot.slane %v472_v33, 4  ;;  %825 = vmatprep.subr.bf16.mxu0 %v951_v49 }
 0x135   : > { %v521_v36 = vsel %vm404_vm1, %v519_v32, %v520_v34  ;;  %v474_v37 = vsel %vm411_vm2, %v472_v33, %v473_v35  ;;  %v896_v38 = vld [vmem:[#allocation2 + $0x8] sm:$0xff]  }
 0x136   : > { %523 = vst [vmem:[#allocation2 + $0x24] sm:$0xc] %v521_v36  ;;  %476 = vst [vmem:[#allocation2 + $0x14] sm:$0xc] %v474_v37  ;;  %v531_v39 = vpop.permute.xlu0 %530  ;;  %v484_v40 = vpop.permute.xlu1 %483  ;;  %826 = vmatpush3.bf16.msra.mxu0 %v896_v38 }
 0x137   : > { %v532_v41 = vrot.slane %v531_v39, 4  ;;  %v485_v42 = vrot.slane %v484_v40, 4  ;;  %827 = vmatprep.subr.bf16.mxu0 %v951_v49 }
 0x139   : > { %v533_v43 = vsel %vm418_vm3, %v531_v39, %v532_v41  ;;  %v486_v44 = vsel %vm425_vm4, %v484_v40, %v485_v42 }
 0x13a   : > { %535 = vst [vmem:[#allocation2 + $0x28] sm:$0xc] %v533_v43  ;;  %488 = vst [vmem:[#allocation2 + $0x18] sm:$0xc] %v486_v44  ;;  %v543_v45 = vpop.permute.xlu0 %542  ;;  %v496_v46 = vpop.permute.xlu1 %495 }
 0x13b   : > { %v544_v47 = vrot.slane %v543_v45, 4  ;;  %v497_v48 = vrot.slane %v496_v46, 4 }
 0x13d   : > { %v545_v50 = vsel %vm432_vm5, %v543_v45, %v544_v47  ;;  %v498_v51 = vsel %vm439_vm6, %v496_v46, %v497_v48  ;;  %v897_v52 = vld [vmem:[#allocation2 + $0x10] sm:$0xff]  }
 0x13e   : > { %547 = vst [vmem:[#allocation2 + $0x2c] sm:$0xc] %v545_v50  ;;  %500 = vst [vmem:[#allocation2 + $0x1c] sm:$0xc] %v498_v51  ;;  %v555_v53 = vpop.permute.xlu0 %554  ;;  %v508_v54 = vpop.permute.xlu1 %507  ;;  %828 = vmatpush3.bf16.msra.mxu0 %v897_v52 }
 0x13f   : > { %v556_v55 = vrot.slane %v555_v53, 4  ;;  %v509_v56 = vrot.slane %v508_v54, 4  ;;  %829 = vmatprep.subr.bf16.mxu0 %v951_v49 }
 0x141   : > { %v557_v57 = vsel %vm446_vm8, %v555_v53, %v556_v55  ;;  %v510_v58 = vsel %vm453_vm7, %v508_v54, %v509_v56 }
 0x142   : > { %559 = vst [vmem:[#allocation2 + $0x30] sm:$0xc] %v557_v57  ;;  %512 = vst [vmem:[#allocation2 + $0x20] sm:$0xc] %v510_v58  ;;  %v549_v59 = vpop.permute.xlu1 %548 }
 0x143   : > { %v550_v60 = vrot.slane %v549_v59, 4 }
 0x145   : > { %v551_v61 = vsel %vm439_vm6, %v549_v59, %v550_v60  ;;  %v898_v62 = vld [vmem:[#allocation2 + $0x18] sm:$0xff]   ;;  %v900_v3 = vld [vmem:[#allocation2 + $0x28] sm:$0xff]  }
 0x146   : > { %553 = vst [vmem:[#allocation2 + $0x30] sm:$0x3] %v551_v61  ;;  %v561_v63 = vpop.permute.xlu1 %560  ;;  %830 = vmatpush3.bf16.msra.mxu0 %v898_v62 }
 0x147   : > { %v562_v0 = vrot.slane %v561_v63, 4  ;;  %831 = vmatprep.subr.bf16.mxu0 %v951_v49 }
 0x149   : > { %v563_v1 = vsel %vm453_vm7, %v561_v63, %v562_v0  ;;  %v899_v2 = vld [vmem:[#allocation2 + $0x20] sm:$0xff]  }
 0x14a   : > { %565 = vst [vmem:[#allocation2 + $0x34] sm:$0x3] %v563_v1  ;;  %832 = vmatpush3.bf16.msra.mxu0 %v899_v2 }
 0x14b   : > { %833 = vmatprep.subr.bf16.mxu0 %v951_v49 }
 0x14e   : > { %834 = vmatpush3.bf16.msra.mxu0 %v900_v3 }
 0x14f   : > { %835 = vmatprep.subr.bf16.mxu0 %v951_v49 }
 0x151   : > { %v901_v4 = vld [vmem:[#allocation2 + $0x30] sm:$0x3f]  }
 0x152   : > { %v628_v5 = vsel %vm626_vm9, %v901_v4, 0 }
 0x153   : > { %836 = vmatpush3.bf16.msra.mxu0 %v628_v5 }
 0x156   : > { %838 = vmatmul.mubr.msk.bf16.vlgmr.msra.gmra.mrb[0].mxu0 %vm439_vm6, %v566_v6 }
 0x229   : > { %v664_v49 = vpop.f32.mrb[0].mxu0 }
 0x22a   : > { %670 = vst [vmem:[%s289_s15] sm:$0xff] %v664_v49  ;;  %v839_v7 = vpop.f32.mrb[1].mxu0 }
 0x22b   : > { %v667_v8 = vpop.f32.mrb[2].mxu0 }
 0x22c   : > { %v840_v9 = vpop.f32.mrb[3].mxu0 }
 0x22d PF: > { %s15_s22 = sadd.s32 1, %s940_s22   ;;  %s1096_s18 = smov %s932_s20 }
 0x22e   : > { %p12_p7 = scmp.ge.s32.totalorder %s15_s22, 18   ;;  %s1097_s19 = smov %s936_s21 }
 0x22f   : > { %s1098_s20 = smov %s1101_s23  ;;  %s1099_s21 = smov %s1105_s24 }
 0x230   :  { %14 = sbr.rel (!%p12_p7) target bundleno = 3 (0x3), region = 78 }

</bundles_post_ra>
